<compile_context>
chip_gen: v6e
topology: v6e:2x2x1
jax: 0.10.0
libtpu: 0.0.40
codegen_flags: <defaults>
</compile_context>

<pallas_src>
import functools

import jax
import jax.numpy as jnp
from jax.experimental import pallas as pl
from jax.experimental.pallas import tpu as pltpu

_NEG = float(jnp.finfo(jnp.float32).min)


def _nce_loss_kernel(im_row_ref, s_col_ref, s_row_ref, im_col_ref,
                     out_ref,
                     diag_ref, top_i2t_ref, top_t2i_ref,
                     *, top_k, scale, row_tile, col_tile):
    i = pl.program_id(0)          # row-tile index ("parallel")
    j = pl.program_id(1)          # col-tile index ("arbitrary", streamed)
    nj = pl.num_programs(1)

    # ---- per-row-tile init (first column tile) ------------------------------
    @pl.when(j == 0)
    def _init():
        # positives: diag_r = im_r . s_r, computed directly (no N x N eye).
        prod = (im_row_ref[...].astype(jnp.float32) *
                s_row_ref[...].astype(jnp.float32))
        diag_ref[...] = jnp.sum(prod, axis=-1, keepdims=True)
        top_i2t_ref[...] = jnp.full(top_i2t_ref.shape, _NEG, dtype=jnp.float32)
        top_t2i_ref[...] = jnp.full(top_t2i_ref.shape, _NEG, dtype=jnp.float32)

    # ---- score tiles for this (row-tile, col-tile) pair ---------------------
    # i2t: im[rows] @ s[cols].T
    sc_i2t = jax.lax.dot_general(
        im_row_ref[...], s_col_ref[...], (((1,), (1,)), ((), ())),
        preferred_element_type=jnp.float32)                       # (TM, TN)
    # t2i: s[rows] @ im[cols].T  == scores.T tile (no in-VMEM transpose)
    sc_t2i = jax.lax.dot_general(
        s_row_ref[...], im_col_ref[...], (((1,), (1,)), ((), ())),
        preferred_element_type=jnp.float32)                       # (TM, TN)

    # Diagonal -> 0 (masked_fill semantics), tile-local iotas only.
    row_iota = jax.lax.broadcasted_iota(jnp.int32, (row_tile, col_tile), 0)
    col_iota = jax.lax.broadcasted_iota(jnp.int32, (row_tile, col_tile), 1)
    eye = (row_iota + i * row_tile) == (col_iota + j * col_tile)
    sc_i2t = jnp.where(eye, 0.0, sc_i2t)
    sc_t2i = jnp.where(eye, 0.0, sc_t2i)

    def tile_topk(tile):
        # Exact top-k of one (TM, TN) tile; removes exactly one occurrence of
        # the current max per pass (matches stable descending sort on ties).
        cur = tile
        tops = []
        for t in range(top_k):
            v = jnp.max(cur, axis=1, keepdims=True)               # (TM, 1)
            tops.append(v)
            if t + 1 < top_k:
                idx = jnp.min(jnp.where(cur == v, col_iota, col_tile),
                              axis=1, keepdims=True)
                cur = jnp.where(col_iota == idx, _NEG, cur)
        return tops

    def merge_into(state_ref, tile):
        # Merge running top-k with this tile's top-k: 2k columns of (TM,1),
        # pure VPU compare/selects.
        cand = [state_ref[:, p:p + 1] for p in range(top_k)] + tile_topk(tile)
        for t in range(top_k):
            v = cand[0]
            for c in cand[1:]:
                v = jnp.maximum(v, c)
            state_ref[:, t:t + 1] = v
            if t + 1 < top_k:
                removed = jnp.zeros(v.shape, dtype=jnp.bool_)
                nxt = []
                for c in cand:
                    hit = jnp.logical_and(jnp.logical_not(removed), c == v)
                    nxt.append(jnp.where(hit, _NEG, c))
                    removed = jnp.logical_or(removed, hit)
                cand = nxt

    merge_into(top_i2t_ref, sc_i2t)
    merge_into(top_t2i_ref, sc_t2i)

    # ---- finalize: CE(scale * [diag, top[1:]], target=0), both branches -----
    @pl.when(j == nj - 1)
    def _finalize():
        d = scale * diag_ref[...]          # (TM, 1); hoisted, shared by branches

        def branch_ce(top_ref):
            m = d
            vals = []
            for p in range(1, top_k):      # column 0 of the sorted top-k is
                sv = scale * top_ref[:, p:p + 1]   # overwritten by diag
                vals.append(sv)
                m = jnp.maximum(m, sv)
            se = jnp.exp(d - m)
            for sv in vals:
                se = se + jnp.exp(sv - m)
            lse = m + jnp.log(se)
            return lse - d                 # per-row CE with target class 0

        out_ref[...] = branch_ce(top_i2t_ref) + branch_ce(top_t2i_ref)


def nce_loss(im, s, top_k=2, scale=100.0, row_tile=None, col_tile=None):
    n, d = im.shape
    assert s.shape == (n, d)
    assert 1 <= top_k <= n
    # Defaults: 256-aligned tiles (v6e/v7x MXU); pass 128 for v5e if desired.
    if row_tile is None:
        row_tile = n if n <= 256 else 256
    if col_tile is None:
        col_tile = n if n <= 256 else 256
    assert n % row_tile == 0 and n % col_tile == 0, "N must divide tile sizes"
    grid = (n // row_tile, n // col_tile)

    kernel = functools.partial(_nce_loss_kernel, top_k=top_k, scale=scale,
                               row_tile=row_tile, col_tile=col_tile)
    per_row = pl.pallas_call(
        kernel,
        out_shape=jax.ShapeDtypeStruct((n, 1), jnp.float32),
        grid_spec=pltpu.PrefetchScalarGridSpec(
            num_scalar_prefetch=0,
            grid=grid,
            in_specs=[
                pl.BlockSpec((row_tile, d), lambda i, j: (i, 0)),   # im rows (i2t lhs)
                pl.BlockSpec((col_tile, d), lambda i, j: (j, 0)),   # s  cols (i2t rhs)
                pl.BlockSpec((row_tile, d), lambda i, j: (i, 0)),   # s  rows (t2i lhs)
                pl.BlockSpec((col_tile, d), lambda i, j: (j, 0)),   # im cols (t2i rhs)
            ],
            out_specs=pl.BlockSpec((row_tile, 1), lambda i, j: (i, 0)),
            scratch_shapes=[
                pltpu.VMEM((row_tile, 1), jnp.float32),        # diag (positives)
                pltpu.VMEM((row_tile, top_k), jnp.float32),    # running top-k i2t
                pltpu.VMEM((row_tile, top_k), jnp.float32),    # running top-k t2i
            ]),
        compiler_params=pltpu.CompilerParams(
            dimension_semantics=("parallel", "arbitrary")),
    )(im, s, s, im)
    # loss = mean(CE_i2t) + mean(CE_t2i) = mean over rows of the summed per-row CE
    return jnp.sum(per_row) / n


def _nce_loss_ref(im, s, top_k=2, scale=100.0):
    """Pure-JAX reference of the intended semantics (for correctness check)."""
    scores = im.astype(jnp.float32) @ s.astype(jnp.float32).T
    n = scores.shape[0]
    diag = jnp.diag(scores)
    eye = jnp.eye(n, dtype=bool)
    masked = jnp.where(eye, 0.0, scores)

    def branch(cand):
        top = -jnp.sort(-cand, axis=1)[:, :top_k]
        logits = top.at[:, 0].set(diag) * scale
        lse = jax.scipy.special.logsumexp(logits, axis=1)
        return jnp.mean(lse - logits[:, 0])

    return branch(masked) + branch(masked.T)


if __name__ == "__main__":
    key = jax.random.PRNGKey(0)
    k1, k2 = jax.random.split(key)
    N, D = 16, 32
    im = jax.random.normal(k1, (N, D), dtype=jnp.float32)
    s = jax.random.normal(k2, (N, D), dtype=jnp.float32)

    # Tiled path: 2x2 grid of (8, 8) score tiles, default top_k=2.
    loss = jax.block_until_ready(nce_loss(im, s, top_k=2, scale=100.0,
                                          row_tile=8, col_tile=8))
    ref = jax.block_until_ready(_nce_loss_ref(im, s, top_k=2, scale=100.0))
    assert jnp.isfinite(loss), f"non-finite loss: {loss}"
    assert jnp.allclose(loss, ref, rtol=1e-3, atol=1e-3), (loss, ref)

    # Second config: different top_k and tiling (1 row tile, 2 col tiles).
    loss3 = jax.block_until_ready(nce_loss(im, s, top_k=3, scale=100.0,
                                           row_tile=16, col_tile=8))
    ref3 = jax.block_until_ready(_nce_loss_ref(im, s, top_k=3, scale=100.0))
    assert jnp.isfinite(loss3), f"non-finite loss: {loss3}"
    assert jnp.allclose(loss3, ref3, rtol=1e-3, atol=1e-3), (loss3, ref3)

    print("KERNEL_OK")
</pallas_src>

<mosaic_0001>
module attributes {stable_mosaic.version = 11 : i64} {
  func.func @_nce_loss_kernel(%arg0: i32, %arg1: i32, %arg2: memref<8x32xf32, #tpu.memory_space<vmem>>, %arg3: memref<8x32xf32, #tpu.memory_space<vmem>>, %arg4: memref<8x32xf32, #tpu.memory_space<vmem>>, %arg5: memref<8x32xf32, #tpu.memory_space<vmem>>, %arg6: memref<8x1xf32, #tpu.memory_space<vmem>>, %arg7: memref<8x1xf32, #tpu.memory_space<vmem>>, %arg8: memref<8x2xf32, #tpu.memory_space<vmem>>, %arg9: memref<8x2xf32, #tpu.memory_space<vmem>>) attributes {dimension_semantics = [#tpu.dimension_semantics<parallel>, #tpu.dimension_semantics<arbitrary>], iteration_bounds = array<i64: 2, 2>, scalar_prefetch = 0 : i64, scratch_operands = 3 : i64, tpu.core_type = #tpu.core_type<tc>, window_params = [{transform_indices = @transform_0, window_bounds = array<i64: 8, 32>}, {transform_indices = @transform_1, window_bounds = array<i64: 8, 32>}, {transform_indices = @transform_2, window_bounds = array<i64: 8, 32>}, {transform_indices = @transform_3, window_bounds = array<i64: 8, 32>}, {transform_indices = @transform_4, window_bounds = array<i64: 8, 1>}]} {
    %c0_i32 = arith.constant 0 : i32
    %0 = arith.cmpi eq, %arg1, %c0_i32 : i32
    %1 = arith.extui %0 : i1 to i32
    %c0_i32_0 = arith.constant 0 : i32
    %2 = arith.cmpi ne, %1, %c0_i32_0 : i32
    scf.if %2 {
      %c0_55 = arith.constant 0 : index
      %c0_56 = arith.constant 0 : index
      %121 = vector.load %arg2[%c0_55, %c0_56] : memref<8x32xf32, #tpu.memory_space<vmem>>, vector<8x32xf32>
      %c0_57 = arith.constant 0 : index
      %c0_58 = arith.constant 0 : index
      %122 = vector.load %arg4[%c0_57, %c0_58] : memref<8x32xf32, #tpu.memory_space<vmem>>, vector<8x32xf32>
      %123 = arith.mulf %121, %122 : vector<8x32xf32>
      %cst_59 = arith.constant dense<0.000000e+00> : vector<8xf32>
      %124 = vector.multi_reduction <add>, %123, %cst_59 [1] : vector<8x32xf32> to vector<8xf32>
      %125 = vector.shape_cast %124 : vector<8xf32> to vector<8x1xf32>
      %c0_60 = arith.constant 0 : index
      %c0_61 = arith.constant 0 : index
      %126 = vector.load %arg7[%c0_60, %c0_61] : memref<8x1xf32, #tpu.memory_space<vmem>>, vector<8x1xf32>
      tpu.vector_store %arg7[%c0_60, %c0_61], %125 {strides = array<i32>} : memref<8x1xf32, #tpu.memory_space<vmem>>, vector<8x1xf32>,
      %cst_62 = arith.constant -3.40282347E+38 : f32
      %127 = vector.broadcast %cst_62 : f32 to vector<8x2xf32>
      %c0_63 = arith.constant 0 : index
      %c0_64 = arith.constant 0 : index
      %128 = vector.load %arg8[%c0_63, %c0_64] : memref<8x2xf32, #tpu.memory_space<vmem>>, vector<8x2xf32>
      tpu.vector_store %arg8[%c0_63, %c0_64], %127 {strides = array<i32>} : memref<8x2xf32, #tpu.memory_space<vmem>>, vector<8x2xf32>,
      %cst_65 = arith.constant -3.40282347E+38 : f32
      %129 = vector.broadcast %cst_65 : f32 to vector<8x2xf32>
      %c0_66 = arith.constant 0 : index
      %c0_67 = arith.constant 0 : index
      %130 = vector.load %arg9[%c0_66, %c0_67] : memref<8x2xf32, #tpu.memory_space<vmem>>, vector<8x2xf32>
      tpu.vector_store %arg9[%c0_66, %c0_67], %129 {strides = array<i32>} : memref<8x2xf32, #tpu.memory_space<vmem>>, vector<8x2xf32>,
    } else {
    }
    %c0 = arith.constant 0 : index
    %c0_1 = arith.constant 0 : index
    %3 = vector.load %arg2[%c0, %c0_1] : memref<8x32xf32, #tpu.memory_space<vmem>>, vector<8x32xf32>
    %c0_2 = arith.constant 0 : index
    %c0_3 = arith.constant 0 : index
    %4 = vector.load %arg3[%c0_2, %c0_3] : memref<8x32xf32, #tpu.memory_space<vmem>>, vector<8x32xf32>
    %cst = arith.constant dense<0.000000e+00> : vector<8x8xf32>
    %5 = tpu.matmul %3, %4, %cst {dimension_numbers = #tpu.dot_dimension_numbers<[1], [1], [0], [0], [0, 0, 1, 0], [], []>} : vector<8x32xf32>, vector<8x32xf32>, vector<8x8xf32> -> vector<8x8xf32>
    %c0_4 = arith.constant 0 : index
    %c0_5 = arith.constant 0 : index
    %6 = vector.load %arg4[%c0_4, %c0_5] : memref<8x32xf32, #tpu.memory_space<vmem>>, vector<8x32xf32>
    %c0_6 = arith.constant 0 : index
    %c0_7 = arith.constant 0 : index
    %7 = vector.load %arg5[%c0_6, %c0_7] : memref<8x32xf32, #tpu.memory_space<vmem>>, vector<8x32xf32>
    %cst_8 = arith.constant dense<0.000000e+00> : vector<8x8xf32>
    %8 = tpu.matmul %6, %7, %cst_8 {dimension_numbers = #tpu.dot_dimension_numbers<[1], [1], [0], [0], [0, 0, 1, 0], [], []>} : vector<8x32xf32>, vector<8x32xf32>, vector<8x8xf32> -> vector<8x8xf32>
    %9 = tpu.iota {dimensions = array<i32: 0>} : vector<8x8xi32>
    %10 = tpu.iota {dimensions = array<i32: 1>} : vector<8x8xi32>
    %c8_i32 = arith.constant 8 : i32
    %11 = arith.muli %arg0, %c8_i32 : i32
    %12 = vector.broadcast %11 : i32 to vector<8x8xi32>
    %13 = arith.addi %9, %12 : vector<8x8xi32>
    %c8_i32_9 = arith.constant 8 : i32
    %14 = arith.muli %arg1, %c8_i32_9 : i32
    %15 = vector.broadcast %14 : i32 to vector<8x8xi32>
    %16 = arith.addi %10, %15 : vector<8x8xi32>
    %17 = arith.cmpi eq, %13, %16 : vector<8x8xi32>
    %cst_10 = arith.constant 0.000000e+00 : f32
    %18 = vector.broadcast %cst_10 : f32 to vector<8x8xf32>
    %19 = arith.select %17, %18, %5 : vector<8x8xi1>, vector<8x8xf32>
    %cst_11 = arith.constant 0.000000e+00 : f32
    %20 = vector.broadcast %cst_11 : f32 to vector<8x8xf32>
    %21 = arith.select %17, %20, %8 : vector<8x8xi1>, vector<8x8xf32>
    %c0_12 = arith.constant 0 : index
    %c0_13 = arith.constant 0 : index
    %22 = vector.load %arg8[%c0_12, %c0_13] : memref<8x2xf32, #tpu.memory_space<vmem>>, vector<8x1xf32>
    %c0_14 = arith.constant 0 : index
    %c1 = arith.constant 1 : index
    %23 = vector.load %arg8[%c0_14, %c1] : memref<8x2xf32, #tpu.memory_space<vmem>>, vector<8x1xf32>
    %cst_15 = arith.constant dense<0xFF800000> : vector<8xf32>
    %24 = vector.multi_reduction <maximumf>, %19, %cst_15 [1] : vector<8x8xf32> to vector<8xf32>
    %25 = vector.shape_cast %24 : vector<8xf32> to vector<8x1xf32>
    %26 = vector.broadcast %25 : vector<8x1xf32> to vector<8x8xf32>
    %27 = arith.cmpf oeq, %19, %26 : vector<8x8xf32>
    %c8_i32_16 = arith.constant 8 : i32
    %28 = vector.broadcast %c8_i32_16 : i32 to vector<8x8xi32>
    %29 = arith.select %27, %10, %28 : vector<8x8xi1>, vector<8x8xi32>
    %cst_17 = arith.constant dense<2147483647> : vector<8xi32>
    %30 = vector.multi_reduction <minsi>, %29, %cst_17 [1] : vector<8x8xi32> to vector<8xi32>
    %31 = vector.shape_cast %30 : vector<8xi32> to vector<8x1xi32>
    %32 = vector.broadcast %31 : vector<8x1xi32> to vector<8x8xi32>
    %33 = arith.cmpi eq, %10, %32 : vector<8x8xi32>
    %cst_18 = arith.constant -3.40282347E+38 : f32
    %34 = vector.broadcast %cst_18 : f32 to vector<8x8xf32>
    %35 = arith.select %33, %34, %19 : vector<8x8xi1>, vector<8x8xf32>
    %cst_19 = arith.constant dense<0xFF800000> : vector<8xf32>
    %36 = vector.multi_reduction <maximumf>, %35, %cst_19 [1] : vector<8x8xf32> to vector<8xf32>
    %37 = vector.shape_cast %36 : vector<8xf32> to vector<8x1xf32>
    %38 = arith.maximumf %22, %23 : vector<8x1xf32>
    %39 = arith.maximumf %38, %25 : vector<8x1xf32>
    %40 = arith.maximumf %39, %37 : vector<8x1xf32>
    %c0_20 = arith.constant 0 : index
    %c0_21 = arith.constant 0 : index
    %41 = vector.load %arg8[%c0_20, %c0_21] : memref<8x2xf32, #tpu.memory_space<vmem>>, vector<8x1xf32>
    tpu.vector_store %arg8[%c0_20, %c0_21], %40 {strides = array<i32>} : memref<8x2xf32, #tpu.memory_space<vmem>>, vector<8x1xf32>,
    %false = arith.constant false
    %42 = vector.broadcast %false : i1 to vector<8x1xi1>
    %cst_22 = arith.constant dense<true> : vector<8x1xi1>
    %43 = arith.xori %42, %cst_22 : vector<8x1xi1>
    %44 = arith.cmpf oeq, %22, %40 : vector<8x1xf32>
    %45 = arith.andi %43, %44 : vector<8x1xi1>
    %cst_23 = arith.constant -3.40282347E+38 : f32
    %46 = vector.broadcast %cst_23 : f32 to vector<8x1xf32>
    %47 = arith.select %45, %46, %22 : vector<8x1xi1>, vector<8x1xf32>
    %48 = arith.ori %42, %45 : vector<8x1xi1>
    %cst_24 = arith.constant dense<true> : vector<8x1xi1>
    %49 = arith.xori %48, %cst_24 : vector<8x1xi1>
    %50 = arith.cmpf oeq, %23, %40 : vector<8x1xf32>
    %51 = arith.andi %49, %50 : vector<8x1xi1>
    %cst_25 = arith.constant -3.40282347E+38 : f32
    %52 = vector.broadcast %cst_25 : f32 to vector<8x1xf32>
    %53 = arith.select %51, %52, %23 : vector<8x1xi1>, vector<8x1xf32>
    %54 = arith.ori %48, %51 : vector<8x1xi1>
    %cst_26 = arith.constant dense<true> : vector<8x1xi1>
    %55 = arith.xori %54, %cst_26 : vector<8x1xi1>
    %56 = arith.cmpf oeq, %25, %40 : vector<8x1xf32>
    %57 = arith.andi %55, %56 : vector<8x1xi1>
    %cst_27 = arith.constant -3.40282347E+38 : f32
    %58 = vector.broadcast %cst_27 : f32 to vector<8x1xf32>
    %59 = arith.select %57, %58, %25 : vector<8x1xi1>, vector<8x1xf32>
    %60 = arith.ori %54, %57 : vector<8x1xi1>
    %cst_28 = arith.constant dense<true> : vector<8x1xi1>
    %61 = arith.xori %60, %cst_28 : vector<8x1xi1>
    %62 = arith.cmpf oeq, %37, %40 : vector<8x1xf32>
    %63 = arith.andi %61, %62 : vector<8x1xi1>
    %cst_29 = arith.constant -3.40282347E+38 : f32
    %64 = vector.broadcast %cst_29 : f32 to vector<8x1xf32>
    %65 = arith.select %63, %64, %37 : vector<8x1xi1>, vector<8x1xf32>
    %66 = arith.maximumf %47, %53 : vector<8x1xf32>
    %67 = arith.maximumf %66, %59 : vector<8x1xf32>
    %68 = arith.maximumf %67, %65 : vector<8x1xf32>
    %c0_30 = arith.constant 0 : index
    %c1_31 = arith.constant 1 : index
    %69 = vector.load %arg8[%c0_30, %c1_31] : memref<8x2xf32, #tpu.memory_space<vmem>>, vector<8x1xf32>
    tpu.vector_store %arg8[%c0_30, %c1_31], %68 {strides = array<i32>} : memref<8x2xf32, #tpu.memory_space<vmem>>, vector<8x1xf32>,
    %c0_32 = arith.constant 0 : index
    %c0_33 = arith.constant 0 : index
    %70 = vector.load %arg9[%c0_32, %c0_33] : memref<8x2xf32, #tpu.memory_space<vmem>>, vector<8x1xf32>
    %c0_34 = arith.constant 0 : index
    %c1_35 = arith.constant 1 : index
    %71 = vector.load %arg9[%c0_34, %c1_35] : memref<8x2xf32, #tpu.memory_space<vmem>>, vector<8x1xf32>
    %cst_36 = arith.constant dense<0xFF800000> : vector<8xf32>
    %72 = vector.multi_reduction <maximumf>, %21, %cst_36 [1] : vector<8x8xf32> to vector<8xf32>
    %73 = vector.shape_cast %72 : vector<8xf32> to vector<8x1xf32>
    %74 = vector.broadcast %73 : vector<8x1xf32> to vector<8x8xf32>
    %75 = arith.cmpf oeq, %21, %74 : vector<8x8xf32>
    %c8_i32_37 = arith.constant 8 : i32
    %76 = vector.broadcast %c8_i32_37 : i32 to vector<8x8xi32>
    %77 = arith.select %75, %10, %76 : vector<8x8xi1>, vector<8x8xi32>
    %cst_38 = arith.constant dense<2147483647> : vector<8xi32>
    %78 = vector.multi_reduction <minsi>, %77, %cst_38 [1] : vector<8x8xi32> to vector<8xi32>
    %79 = vector.shape_cast %78 : vector<8xi32> to vector<8x1xi32>
    %80 = vector.broadcast %79 : vector<8x1xi32> to vector<8x8xi32>
    %81 = arith.cmpi eq, %10, %80 : vector<8x8xi32>
    %cst_39 = arith.constant -3.40282347E+38 : f32
    %82 = vector.broadcast %cst_39 : f32 to vector<8x8xf32>
    %83 = arith.select %81, %82, %21 : vector<8x8xi1>, vector<8x8xf32>
    %cst_40 = arith.constant dense<0xFF800000> : vector<8xf32>
    %84 = vector.multi_reduction <maximumf>, %83, %cst_40 [1] : vector<8x8xf32> to vector<8xf32>
    %85 = vector.shape_cast %84 : vector<8xf32> to vector<8x1xf32>
    %86 = arith.maximumf %70, %71 : vector<8x1xf32>
    %87 = arith.maximumf %86, %73 : vector<8x1xf32>
    %88 = arith.maximumf %87, %85 : vector<8x1xf32>
    %c0_41 = arith.constant 0 : index
    %c0_42 = arith.constant 0 : index
    %89 = vector.load %arg9[%c0_41, %c0_42] : memref<8x2xf32, #tpu.memory_space<vmem>>, vector<8x1xf32>
    tpu.vector_store %arg9[%c0_41, %c0_42], %88 {strides = array<i32>} : memref<8x2xf32, #tpu.memory_space<vmem>>, vector<8x1xf32>,
    %false_43 = arith.constant false
    %90 = vector.broadcast %false_43 : i1 to vector<8x1xi1>
    %cst_44 = arith.constant dense<true> : vector<8x1xi1>
    %91 = arith.xori %90, %cst_44 : vector<8x1xi1>
    %92 = arith.cmpf oeq, %70, %88 : vector<8x1xf32>
    %93 = arith.andi %91, %92 : vector<8x1xi1>
    %cst_45 = arith.constant -3.40282347E+38 : f32
    %94 = vector.broadcast %cst_45 : f32 to vector<8x1xf32>
    %95 = arith.select %93, %94, %70 : vector<8x1xi1>, vector<8x1xf32>
    %96 = arith.ori %90, %93 : vector<8x1xi1>
    %cst_46 = arith.constant dense<true> : vector<8x1xi1>
    %97 = arith.xori %96, %cst_46 : vector<8x1xi1>
    %98 = arith.cmpf oeq, %71, %88 : vector<8x1xf32>
    %99 = arith.andi %97, %98 : vector<8x1xi1>
    %cst_47 = arith.constant -3.40282347E+38 : f32
    %100 = vector.broadcast %cst_47 : f32 to vector<8x1xf32>
    %101 = arith.select %99, %100, %71 : vector<8x1xi1>, vector<8x1xf32>
    %102 = arith.ori %96, %99 : vector<8x1xi1>
    %cst_48 = arith.constant dense<true> : vector<8x1xi1>
    %103 = arith.xori %102, %cst_48 : vector<8x1xi1>
    %104 = arith.cmpf oeq, %73, %88 : vector<8x1xf32>
    %105 = arith.andi %103, %104 : vector<8x1xi1>
    %cst_49 = arith.constant -3.40282347E+38 : f32
    %106 = vector.broadcast %cst_49 : f32 to vector<8x1xf32>
    %107 = arith.select %105, %106, %73 : vector<8x1xi1>, vector<8x1xf32>
    %108 = arith.ori %102, %105 : vector<8x1xi1>
    %cst_50 = arith.constant dense<true> : vector<8x1xi1>
    %109 = arith.xori %108, %cst_50 : vector<8x1xi1>
    %110 = arith.cmpf oeq, %85, %88 : vector<8x1xf32>
    %111 = arith.andi %109, %110 : vector<8x1xi1>
    %cst_51 = arith.constant -3.40282347E+38 : f32
    %112 = vector.broadcast %cst_51 : f32 to vector<8x1xf32>
    %113 = arith.select %111, %112, %85 : vector<8x1xi1>, vector<8x1xf32>
    %114 = arith.maximumf %95, %101 : vector<8x1xf32>
    %115 = arith.maximumf %114, %107 : vector<8x1xf32>
    %116 = arith.maximumf %115, %113 : vector<8x1xf32>
    %c0_52 = arith.constant 0 : index
    %c1_53 = arith.constant 1 : index
    %117 = vector.load %arg9[%c0_52, %c1_53] : memref<8x2xf32, #tpu.memory_space<vmem>>, vector<8x1xf32>
    tpu.vector_store %arg9[%c0_52, %c1_53], %116 {strides = array<i32>} : memref<8x2xf32, #tpu.memory_space<vmem>>, vector<8x1xf32>,
    %c1_i32 = arith.constant 1 : i32
    %118 = arith.cmpi eq, %arg1, %c1_i32 : i32
    %119 = arith.extui %118 : i1 to i32
    %c0_i32_54 = arith.constant 0 : i32
    %120 = arith.cmpi ne, %119, %c0_i32_54 : i32
    scf.if %120 {
      %c0_55 = arith.constant 0 : index
      %c0_56 = arith.constant 0 : index
      %121 = vector.load %arg7[%c0_55, %c0_56] : memref<8x1xf32, #tpu.memory_space<vmem>>, vector<8x1xf32>
      %cst_57 = arith.constant 1.000000e+02 : f32
      %122 = vector.broadcast %cst_57 : f32 to vector<8x1xf32>
      %123 = arith.mulf %122, %121 : vector<8x1xf32>
      %c0_58 = arith.constant 0 : index
      %c1_59 = arith.constant 1 : index
      %124 = vector.load %arg8[%c0_58, %c1_59] : memref<8x2xf32, #tpu.memory_space<vmem>>, vector<8x1xf32>
      %cst_60 = arith.constant 1.000000e+02 : f32
      %125 = vector.broadcast %cst_60 : f32 to vector<8x1xf32>
      %126 = arith.mulf %125, %124 : vector<8x1xf32>
      %127 = arith.maximumf %123, %126 : vector<8x1xf32>
      %128 = arith.subf %123, %127 : vector<8x1xf32>
      %129 = math.exp %128 : vector<8x1xf32>
      %130 = arith.subf %126, %127 : vector<8x1xf32>
      %131 = math.exp %130 : vector<8x1xf32>
      %132 = arith.addf %129, %131 : vector<8x1xf32>
      %133 = math.log %132 : vector<8x1xf32>
      %134 = arith.addf %127, %133 : vector<8x1xf32>
      %135 = arith.subf %134, %123 : vector<8x1xf32>
      %c0_61 = arith.constant 0 : index
      %c1_62 = arith.constant 1 : index
      %136 = vector.load %arg9[%c0_61, %c1_62] : memref<8x2xf32, #tpu.memory_space<vmem>>, vector<8x1xf32>
      %cst_63 = arith.constant 1.000000e+02 : f32
      %137 = vector.broadcast %cst_63 : f32 to vector<8x1xf32>
      %138 = arith.mulf %137, %136 : vector<8x1xf32>
      %139 = arith.maximumf %123, %138 : vector<8x1xf32>
      %140 = arith.subf %123, %139 : vector<8x1xf32>
      %141 = math.exp %140 : vector<8x1xf32>
      %142 = arith.subf %138, %139 : vector<8x1xf32>
      %143 = math.exp %142 : vector<8x1xf32>
      %144 = arith.addf %141, %143 : vector<8x1xf32>
      %145 = math.log %144 : vector<8x1xf32>
      %146 = arith.addf %139, %145 : vector<8x1xf32>
      %147 = arith.subf %146, %123 : vector<8x1xf32>
      %148 = arith.addf %135, %147 : vector<8x1xf32>
      %c0_64 = arith.constant 0 : index
      %c0_65 = arith.constant 0 : index
      %149 = vector.load %arg6[%c0_64, %c0_65] : memref<8x1xf32, #tpu.memory_space<vmem>>, vector<8x1xf32>
      tpu.vector_store %arg6[%c0_64, %c0_65], %148 {strides = array<i32>} : memref<8x1xf32, #tpu.memory_space<vmem>>, vector<8x1xf32>,
    } else {
    }
    return
  }
  func.func @transform_0(%arg0: i32, %arg1: i32) -> (i32, i32) {
    %c0_i32 = arith.constant 0 : i32
    %c0_i32_0 = arith.constant 0 : i32
    return %arg0, %c0_i32 : i32, i32
  }
  func.func @transform_1(%arg0: i32, %arg1: i32) -> (i32, i32) {
    %c0_i32 = arith.constant 0 : i32
    %c0_i32_0 = arith.constant 0 : i32
    return %arg1, %c0_i32 : i32, i32
  }
  func.func @transform_2(%arg0: i32, %arg1: i32) -> (i32, i32) {
    %c0_i32 = arith.constant 0 : i32
    %c0_i32_0 = arith.constant 0 : i32
    return %arg0, %c0_i32 : i32, i32
  }
  func.func @transform_3(%arg0: i32, %arg1: i32) -> (i32, i32) {
    %c0_i32 = arith.constant 0 : i32
    %c0_i32_0 = arith.constant 0 : i32
    return %arg1, %c0_i32 : i32, i32
  }
  func.func @transform_4(%arg0: i32, %arg1: i32) -> (i32, i32) {
    %c0_i32 = arith.constant 0 : i32
    %c0_i32_0 = arith.constant 0 : i32
    return %arg0, %c0_i32 : i32, i32
  }
}

</mosaic_0001>

<bundles_post_ra>
// kernel: tpu_custom_call.1
= control target key start
LH: loop header
LB: loop body
LE: loop exit
PB: predicated region body
PF: predicated region fallthrough
CT: control target
= control target key end

     0   :  { %s1605_s0 = inlined_call_operand.hbm [shape: f32[16,32], index: 0, kind: input, shape index: {}]   ;;  %s1606_s1 = inlined_call_operand.hbm [shape: f32[16,32], index: 1, kind: input, shape index: {}]   ;;  %s1607_s2 = inlined_call_operand.hbm [shape: f32[16,32], index: 2, kind: input, shape index: {}]   ;;  %s1608_s3 = inlined_call_operand.hbm [shape: f32[16,32], index: 3, kind: input, shape index: {}]   ;;  %s1609_s4 = inlined_call_operand.vmem [shape: f32[16,1], index: 4, kind: output, shape index: {}]  }
   0x1   :  { %1624 = sst [smem:[#allocation22_spill]] %s1605_s0 }
   0x2   :  { %1625 = sst [smem:[#allocation23_spill]] %s1606_s1 }
   0x3   :  { %1626 = sst [smem:[#allocation24_spill]] %s1609_s4 }
   0x4   :  { %9 = vsyncpa [#allocation6], 0 }
   0x5   :  { %11 = vsyncpa [#allocation6 + $0x1], 0 }
   0x6   :  { %12 = vsyncpa [#allocation8], 0 }
   0x7   :  { %14 = vsyncpa [#allocation8 + $0x1], 0 }
   0x8   :  { %15 = vsyncpa [#allocation11], 0 }
   0x9   :  { %17 = vsyncpa [#allocation11 + $0x1], 0  ;;  %s1283_s15 = smov 0   ;;  %s1285_s16 = smov 0  }
   0xa   :  { %s1287_s17 = smov 0   ;;  %s1289_s18 = smov 0  }
   0xb   :  { %s1291_s19 = smov 0   ;;  %s1293_s20 = smov 0  }
   0xc   :  { %s1295_s21 = smov 0   ;;  %s1297_s22 = smov 0  }
   0xd   :  { %s1299_s23 = smov 0   ;;  %s1301_s24 = smov 0  }
   0xe   :  { %s1303_s25 = smov 0  }
   0xf LB: > { %1627 = sst [smem:[#allocation16_spill]] %s1227_s21  ;;  %s1610_s26 = sadd.s32 4294967295, %s1243_s25   ;;  %s1243_s25 = sphi %s1303_s25, %s23_s25   ;;  %s1239_s24 = sphi %s1301_s24, %s1661_s24   ;;  %s1235_s23 = sphi %s1299_s23, %s1669_s23   ;;  %s1231_s22 = sphi %s1297_s22, %s1659_s22   ;;  %s1227_s21 = sphi %s1295_s21, %s1668_s21   ;;  %s1223_s20 = sphi %s1293_s20, %s1667_s20   ;;  %s1219_s19 = sphi %s1291_s19, %s1666_s19   ;;  %s1215_s18 = sphi %s1289_s18, %s1665_s18   ;;  %s1211_s17 = sphi %s1287_s17, %s1664_s17   ;;  %s1207_s16 = sphi %s1285_s16, %s1663_s16   ;;  %s1203_s15 = sphi %s1283_s15, %s1662_s15  }
  0x10   : > { %1628 = sst [smem:[#allocation17_spill]] %s1231_s22  ;;  %s32_s27 = sadd.s32 1, %s1235_s23 }
  0x11   : > { %1629 = sst [smem:[#allocation18_spill]] %s1239_s24  ;;  %p1338_p0 = scmp.ge.s32.totalorder %s32_s27, 2 }
  0x12   : > { %p1613_p1 = scmp.eq.s32.totalorder %s1243_s25, 0  ;;  %p1345_p2 = scmp.eq.s32.totalorder %s1610_s26, 0 }
  0x13   : > { %s68_s30 = sadd.s32 1, %s1211_s17  ;;  %s1671_s27 = smov (%p1338_p0, %s32_s27), 0 }
  0x14   : > { %1632 = sst [smem:[#allocation19_spill]] %s1671_s27  ;;  %p75_p3 = scmp.ne.s32.totalorder %s1211_s17, %s1207_s16 }
  0x15   : > { %p81_p4 = scmp.ne.s32.totalorder %s1207_s16, %s1203_s15  ;;  %s65_s5 = ssub.s32 %s1235_s23, %s1671_s27 }
  0x16   : > { %p66_p5 = scmp.eq.s32.totalorder %s65_s5, 0  ;;  %p77_p6 = por %p75_p3, %p1613_p1 }
  0x17   : > { %p1363_p7 = por %p81_p4, %p1345_p2  ;;  %p1612_p8 = scmp.lt.s32.totalorder %s1243_s25, 4 }
  0x18   : > { %s1369_s7 = scalar_select %p66_p5, %s1211_s17, %s68_s30  }
  0x19   : > { %s1633_s6 = scalar_select %p1363_p7, 1, 0 }
  0x1a   : > { %1634 = sst [smem:[#allocation20_spill]] %s1369_s7  ;;  %s201_s8 = sand.u32 1, %s1243_s25  }
  0x1b   : > { %s1611_s9 = sand.u32 1, %s1211_s17   ;;  %s1614_s11 = sshll.u32 %s1235_s23, 7 }
  0x1c   : > { %s1375_s10 = sshll.u32 %s1611_s9, 3  ;;  %s1635_s1 = sld [smem:[#allocation23_spill]] }
  0x1d   : > { %s205_s15 = scalar_lea.vmem [#allocation7], %s1375_s10  ;;  %p1386_p9 = pnand %p1612_p8, %p77_p6 }
  0x1e   : > { %s212_s5 = sshll.u32 %s205_s15, 4  ;;  %p868_p10 = scmp.ge.s32.totalorder %s1243_s25, 1  ;;  %s213_s5 = int_to_ptr.vmem [resolvable:$true] %s212_s5 }
  0x1f   : > { %p253_p11 = scmp.lt.s32.totalorder %s1243_s25, 5  ;;  %s1392_s30 = scalar_lea.sflag [#allocation8], %s201_s8 }
  0x20   : > { %p1620_p12 = pneg %p1386_p9  ;;  %s1042_s9 = scalar_lea.vmem %s213_s5, 128 }
  0x21   : > { %p1043_p13 = scmp.ne.s32.totalorder %s213_s5, %s1042_s9  ;;  %s1245_s12 = smov [#allocation7]  }
  0x22   : > { %s210_s14 = scalar_lea.hbm %s1635_s1, %s1614_s11  ;;  %s1047_s13 = sshll.u32 %s1245_s12, 4  ;;  %s1048_s13 = int_to_ptr.vmem [resolvable:$false] %s1047_s13 }
  0x23   : > { %p1045_p3 = pnand %p1043_p13, %p1620_p12  ;;  %s1049_s15 = scalar_lea.vmem %s1048_s13, 256 }
  0x24   : > { %p1050_p5 = scmp.lt.s32.totalorder %s213_s5, %s1048_s13  ;;  %p1051_p6 = scmp.lt.s32.totalorder %s1049_s15, %s1042_s9 }
  0x25   : > { %p1046_p4 = pneg %p1045_p3 }
  0x26   : > { %p1052_p8 = por %p1051_p6, %p1050_p5 }
  0x28   : > { %p1053_p1 = pnand %p1052_p8, %p1046_p4 }
  0x2a   : > { %1056 = shalt.err (!%p1053_p1)
}
  0x2b   : > { %912 = dma.hbm_to_vmem [thread:$0]  (!%p1386_p9), %s210_s14, 128, %s213_s5, %s1392_s30  }
  0x2c   : > { %p1406_p1 = pnand %p868_p10, %p253_p11  ;;  %s35_s9 = sadd.s32 1, %s1239_s24 }
  0x2d   : > { %s42_s12 = sadd.s32 1, %s1223_s20  ;;  %s1673_s9 = smov (!%p1338_p0, %s35_s9), %s1239_s24 }
  0x2e   : > { %p49_p8 = scmp.ne.s32.totalorder %s1223_s20, %s1219_s19  ;;  %p55_p13 = scmp.ne.s32.totalorder %s1219_s19, %s1215_s18 }
  0x2f   : > { %p37_p3 = scmp.ge.s32.totalorder %s1673_s9, 2  ;;  %s183_s13 = sand.u32 1, %s1223_s20  }
  0x30   : > { %p1638_p4 = scmp.eq.s32.totalorder %s1243_s25, 0  ;;  %p1424_p6 = por %p1345_p2, %p55_p13 }
  0x31   : > { %s1675_s9 = smov (%p37_p3, %s1673_s9), 0  ;;  %s860_s5 = sshll.u32 %s183_s13, 3 }
  0x32   : > { %p51_p5 = por %p1638_p4, %p49_p8  ;;  %1640 = sst [smem:[#allocation21_spill]] %s1675_s9 }
  0x33   : > { %s1639_s14 = scalar_select %p1424_p6, 1, 0 }
  0x34   : > { %s39_s15 = ssub.s32 %s1239_s24, %s1675_s9  ;;  %s861_s28 = sshll.u32 %s1239_s24, 7 }
  0x35   : > { %p40_p10 = scmp.eq.s32.totalorder %s39_s15, 0  ;;  %s1641_s0 = sld [smem:[#allocation22_spill]] }
  0x36   : > { %s187_s27 = scalar_lea.vmem [#allocation5], %s860_s5  ;;  %p1642_p0 = scmp.lt.s32.totalorder %s1243_s25, 4 }
  0x37   : > { %s194_s7 = sshll.u32 %s187_s27, 4  ;;  %s1448_s15 = scalar_lea.hbm %s1607_s2, %s861_s28  ;;  %s195_s7 = int_to_ptr.vmem [resolvable:$true] %s194_s7 }
  0x38   : > { %s1437_s21 = scalar_select %p40_p10, %s1223_s20, %s42_s12  }
  0x39   : > { %p1441_p2 = pnand %p1642_p0, %p51_p5  ;;  %s223_s9 = scalar_lea.vmem [#allocation9], %s860_s5 }
  0x3a   : > { %s230_s1 = sshll.u32 %s223_s9, 4  ;;  %s184_s11 = scalar_lea.sflag [#allocation6], %s183_s13  ;;  %s231_s1 = int_to_ptr.vmem [resolvable:$true] %s230_s1 }
  0x3b   : > { %s192_s18 = scalar_lea.hbm %s1641_s0, %s861_s28  ;;  %p1059_p11 = pneg %p1441_p2 }
  0x3c   : > { %s1070_s27 = scalar_lea.vmem %s195_s7, 128  ;;  %s1246_s12 = smov [#allocation5]  }
  0x3d   : > { %p1071_p8 = scmp.ne.s32.totalorder %s195_s7, %s1070_s27  ;;  %s1075_s0 = sshll.u32 %s1246_s12, 4  ;;  %s1076_s0 = int_to_ptr.vmem [resolvable:$false] %s1075_s0 }
  0x3e   : > { %s1077_s24 = scalar_lea.vmem %s1076_s0, 256  ;;  %p1078_p4 = scmp.lt.s32.totalorder %s195_s7, %s1076_s0 }
  0x3f   : > { %p1073_p13 = pnand %p1071_p8, %p1059_p11  ;;  %p1079_p5 = scmp.lt.s32.totalorder %s1077_s24, %s1070_s27 }
  0x41   : > { %p1074_p3 = pneg %p1073_p13  ;;  %p1080_p10 = por %p1079_p5, %p1078_p4 }
  0x43   : > { %p1081_p0 = pnand %p1080_p10, %p1074_p3 }
  0x45   : > { %1084 = shalt.err (!%p1081_p0)
}
  0x46   : > { %909 = dma.hbm_to_vmem [thread:$0]  (!%p1441_p2), %s192_s18, 128, %s195_s7, %s184_s11  }
  0x47   : > { %s1098_s4 = scalar_lea.vmem %s231_s1, 128  ;;  %s1247_s22 = smov [#allocation9]  }
  0x48   : > { %p1099_p12 = scmp.ne.s32.totalorder %s231_s1, %s1098_s4  ;;  %s1103_s9 = sshll.u32 %s1247_s22, 4  ;;  %s1104_s9 = int_to_ptr.vmem [resolvable:$false] %s1103_s9 }
  0x49   : > { %s1105_s13 = scalar_lea.vmem %s1104_s9, 256  ;;  %p1106_p7 = scmp.lt.s32.totalorder %s231_s1, %s1104_s9 }
  0x4a   : > { %p1101_p8 = pnand %p1099_p12, %p1059_p11  ;;  %p1107_p6 = scmp.lt.s32.totalorder %s1105_s13, %s1098_s4 }
  0x4c   : > { %p1102_p13 = pneg %p1101_p8  ;;  %p1108_p4 = por %p1107_p6, %p1106_p7 }
  0x4e   : > { %p1109_p3 = pnand %p1108_p4, %p1102_p13 }
  0x50   : > { %1112 = shalt.err (!%p1109_p3)
}
  0x51   : > { %915 = dma.hbm_to_vmem [thread:$0]  (!%p1441_p2), %s1448_s15, 128, %s231_s1, %s1392_s30  }
  0x52   : > { %s1644_s0 = sshll.u32 %s1235_s23, 7  ;;  %s241_s28 = scalar_lea.vmem [#allocation10], %s1375_s10 }
  0x53   : > { %s246_s5 = scalar_lea.hbm %s1608_s3, %s1644_s0  ;;  %s248_s18 = sshll.u32 %s241_s28, 4  ;;  %s249_s18 = int_to_ptr.vmem [resolvable:$true] %s248_s18 }
  0x54   : > { %s1645_s11 = sand.u32 1, %s1211_s17   ;;  %s1126_s12 = scalar_lea.vmem %s249_s18, 128 }
  0x55   : > { %s238_s27 = scalar_lea.sflag [#allocation11], %s1645_s11  ;;  %p1127_p7 = scmp.ne.s32.totalorder %s249_s18, %s1126_s12 }
  0x56   : > { %p1646_p12 = pneg %p1386_p9  ;;  %s1248_s29 = smov [#allocation10]  }
  0x57   : > { %s1131_s4 = sshll.u32 %s1248_s29, 4  ;;  %s1132_s4 = int_to_ptr.vmem [resolvable:$false] %s1131_s4 }
  0x58   : > { %p1129_p6 = pnand %p1127_p7, %p1646_p12  ;;  %s1133_s30 = scalar_lea.vmem %s1132_s4, 256 }
  0x59   : > { %p1134_p2 = scmp.lt.s32.totalorder %s249_s18, %s1132_s4  ;;  %p1135_p5 = scmp.lt.s32.totalorder %s1133_s30, %s1126_s12 }
  0x5a   : > { %p1130_p11 = pneg %p1129_p6 }
  0x5b   : > { %p1136_p10 = por %p1135_p5, %p1134_p2 }
  0x5d   : > { %p1137_p0 = pnand %p1136_p10, %p1130_p11 }
  0x5f   : > { %1140 = shalt.err (!%p1137_p0)
}
  0x60   : > { %918 = dma.hbm_to_vmem [thread:$0]  (!%p1386_p9), %s246_s5, 128, %s249_s18, %s238_s27  }
  0x61   : > { %257 = sbr.rel (%p1406_p1) target bundleno = 1815 (0x717), region = 36  ;;  %s259_s10 = sand.u32 (!%p1406_p1), 1, %s1219_s19  }
  0x62   : > { %s1480_s15 = sshll.u32 (!%p1406_p1), %s259_s10, 3  ;;  %s260_s1 = scalar_lea.sflag (!%p1406_p1), [#allocation6], %s259_s10 }
  0x63   : > { %s263_s22 = scalar_lea.vmem (!%p1406_p1), [#allocation5], %s1480_s15  ;;  %p1647_p8 = scmp.ne.s32.totalorder (!%p1406_p1), %s1639_s14, 0 }
  0x66   : > { %1186 = dma.done.wait (%p1647_p8), %s260_s1, 128  }
  0x67   : > { %1188 = vsyncadd (%p1647_p8), %s260_s1, 4294967168  ;;  %s1648_s9 = sadd.s32 4294967295, %s1243_s25   ;;  %s270_s8 = sand.u32 1, %s1207_s16  }
  0x68   : > { %s268_s26 = sand.u32 1, %s1648_s9   ;;  %s1490_s13 = sshll.u32 %s270_s8, 3 }
  0x69   : > { %s269_s0 = scalar_lea.sflag [#allocation8], %s268_s26  ;;  %s272_s24 = scalar_lea.vmem [#allocation7], %s1490_s13 }
  0x6a   : > { %p1649_p9 = scmp.ne.s32.totalorder %s1633_s6, 0 }
  0x6c   : > { %1190 = dma.done.wait (%p1649_p9), %s269_s0, 128  }
  0x6d   : > { %1192 = vsyncadd (%p1649_p9), %s269_s0, 4294967168  ;;  %s281_s7 = scalar_lea.vmem [#allocation9], %s1480_s15 }
  0x6e   : > { %1194 = dma.done.wait (%p1647_p8), %s269_s0, 128  }
  0x6f   : > { %1196 = vsyncadd (%p1647_p8), %s269_s0, 4294967168  ;;  %s287_s5 = scalar_lea.sflag [#allocation11], %s270_s8  ;;  %s290_s28 = scalar_lea.vmem [#allocation10], %s1490_s13 }
  0x70   : > { %1198 = dma.done.wait (%p1649_p9), %s287_s5, 128  }
  0x71   : > { %1200 = vsyncadd (%p1649_p9), %s287_s5, 4294967168  ;;  %s1650_s18 = sld [smem:[#allocation17_spill]] }
  0x72   : > { %s1651_s29 = sld [smem:[#allocation24_spill]] }
  0x73   : > { %s1652_s14 = sld [smem:[#allocation16_spill]] }
  0x77   : > { %p329_p1 = scmp.lt.s32.totalorder %s1650_s18, 1 }
  0x79   : > { %s1677_s18 = smov (!%p329_p1, %s1650_s18), 1  ;;  %p874_p13 = scmp.ne.s32.totalorder %s1652_s14, 0 }
  0x7a   : > { %s873_s11 = sshll.u32 %s1677_s18, 3 }
  0x7b   : > { %s1512_s4 = scalar_lea.vmem %s1651_s29, %s873_s11  ;;  %336 = sbr.rel (%p874_p13) target bundleno = 272 (0x110), region = 56 }
  0x80   : > { %v337_v0 = vld [vmem:[%s263_s22] sm:$0xff]  ;;  %vm340_vm0 = vcmask 261120   ;;  %vm346_vm1 = vcmask 15360   ;;  %v1249_v4 = vmov -3.4028235e+38   ;;  %vm344_vm2 = vcmask 7168  }
  0x81   : > { %v338_v1 = vld [vmem:[%s281_s7] sm:$0xff]  ;;  %347 = vst.msk [vmem:[#allocation3] sm:$0xff] %vm346_vm1, %v1249_v4  ;;  %348 = vst.msk [vmem:[#allocation4] sm:$0xff] %vm346_vm1, %v1249_v4 }
  0x82   : > { %v339_v2 = vmul.f32 %v338_v1, %v337_v0 }
  0x84   : > { %v341_v3 = vsel %vm340_vm0, %v339_v2, 0.0 }
  0x85   : > { %342 = vadd.xlane.f32.xlu0 %v341_v3 }
 0x10e   : > { %v343_v5 = vpop.xlane.xlu0 %342 }
 0x10f   : > { %345 = vst.msk [vmem:[#allocation2] sm:$0xff] %vm344_vm2, %v343_v5 }
 0x110 PF: > { %v350_v6 = vld [vmem:[%s272_s24] sm:$0xff]  ;;  %s1653_s6 = sld [smem:[#allocation17_spill]]  ;;  %vm351_vm3 = vcmask 261120   ;;  %v1250_v8 = vmov 0.0   ;;  %vm1251_vm4 = vmmov 0   ;;  %v349_v9 = vld [vmem:[%s263_s22] sm:$0xff]  ;;  %v506_v11 = vlaneseq }
 0x111   : > { %s1654_s30 = sld [smem:[#allocation16_spill]]  ;;  %v429_v7 = vld [vmem:[%s290_s28] sm:$0xff]  ;;  %888 = vmatprep.subr.mxu0 %v1250_v8  ;;  %893 = vmatprep.subr.mxu1 %v1250_v8  ;;  %v428_v10 = vld [vmem:[%s281_s7] sm:$0xff]  ;;  %vm520_vm6 = vcmask 64512   ;;  %s1252_s15 = smov 127   ;;  %vm1623_vm13 = vcmask 7168  }
 0x112   : > { %889 = vmatpush3.xpose.msk.msra.mxu0 %vm351_vm3, %v350_v6  ;;  %890 = vmatprep.mubr.msk.f32.mxu0 %vm1251_vm4, %v1250_v8  ;;  %v507_v12 = vshrl.u32 %v506_v11, 7  ;;  %v509_v13 = vand.u32 127, %v506_v11  ;;  %v588_v58 = vld [vmem:[#allocation4] sm:$0xff]  ;;  %v519_v59 = vld [vmem:[#allocation3] sm:$0xff]  ;;  %s1253_s22 = smov 1   ;;  %vm1255_vm2 = vmmov 1  }
 0x113   : > { %894 = vmatpush3.xpose.msk.msra.mxu1 %vm351_vm3, %v429_v7  ;;  %895 = vmatprep.mubr.msk.f32.mxu1 %vm1251_vm4, %v1250_v8  ;;  %v1254_v7 = vmov 0  }
 0x115   : > { %891 = vmatmul.mubr.msk.f32.vlgmr.msra.gmra.mxu0 %vm351_vm3, %v349_v9 }
 0x116   : > { %896 = vmatmul.mubr.msk.f32.vlgmr.msra.gmra.mxu1 %vm351_vm3, %v428_v10  ;;  %s879_s10 = sshll.u32 %s1653_s6, 3 }
 0x117   : > { %s880_s1 = sshll.u32 %s1654_s30, 3  ;;  %v511_v14 = vstv %s879_s10  ;;  %p881_p4 = scmp.ne.s32.totalorder %s1654_s30, 1 }
 0x118   : > { %v514_v15 = vstv %s880_s1  ;;  %v512_v16 = vadd.s32 %v511_v14, %v507_v12  ;;  %s1256_s9 = smov (!%p881_p4), 127   ;;  %s1257_s26 = smov (!%p881_p4), 1  }
 0x119   : > { %v515_v17 = vadd.s32 %v514_v15, %v509_v13 }
 0x11b   : > { %vm516_vm5 = vcmp.eq.s32.totalorder %v512_v16, %v515_v17 }
 0x1d5   : > { %v424_v18 = vpop.f32.mrf.mxu0 }
 0x1d6   : > { %v517_v19 = vsel %vm516_vm5, 0.0, %v424_v18  ;;  %v502_v20 = vpop.f32.mrf.mxu1 }
 0x1d7   : > { %v892_v21 = vpop.f32.mrf.mxu0  ;;  %v518_v22 = vsel %vm516_vm5, 0.0, %v502_v20  ;;  %v521_v23 = vsel %vm520_vm6, %v517_v19, -inf }
 0x1d8   : > { %522 = vmax.xlane.f32.xlu0 %v521_v23  ;;  %v897_v24 = vpop.f32.mrf.mxu1  ;;  %v589_v25 = vsel %vm520_vm6, %v518_v22, -inf }
 0x1dc   : > { %590 = vmax.xlane.f32.xlu0 %v589_v25 }
 0x261   : > { %v1527_v26 = vpop.xlane.xlu0 %522 }
 0x262   : > { %vm524_vm7 = vcmp.eq.f32.partialorder %v517_v19, %v1527_v26 }
 0x263   : > { %v525_v27 = vsel %vm524_vm7, %v509_v13, 8 }
 0x264   : > { %v526_v28 = vsel %vm520_vm6, %v525_v27, 2147483647 }
 0x265   : > { %v1531_v29 = vpop.xlane.xlu0 %590  ;;  %v528_v30 = vshra.s32 %v526_v28, 16  ;;  %v527_v36 = vand.u32 65535, %v526_v28 }
 0x266   : > { %vm592_vm8 = vcmp.eq.f32.partialorder %v518_v22, %v1531_v29 }
 0x267   : > { %v530_v31 = vcvt.s32.f32 %v528_v30  ;;  %v593_v32 = vsel %vm592_vm8, %v509_v13, 8  ;;  %v529_v38 = vcvt.s32.f32 %v527_v36 }
 0x268   : > { %v594_v33 = vsel %vm520_vm6, %v593_v32, 2147483647 }
 0x269   : > { %531 = vmin.xlane.f32.xlu1 %v530_v31  ;;  %v596_v34 = vshra.s32 %v594_v33, 16  ;;  %v595_v39 = vand.u32 65535, %v594_v33 }
 0x26b   : > { %v598_v35 = vcvt.s32.f32 %v596_v34  ;;  %v597_v42 = vcvt.s32.f32 %v595_v39 }
 0x26d   : > { %599 = vmin.xlane.f32.xlu1 %v598_v35 }
 0x2f2   : > { %v532_v37 = vpop.xlane.xlu1 %531 }
 0x2f3   : > { %vm533_vm9 = vcmp.eq.f32.partialorder %v530_v31, %v532_v37  ;;  %v538_v44 = vcvt.f32.s32 %v532_v37 }
 0x2f4   : > { %v534_v40 = vsel %vm533_vm9, %v529_v38, inf }
 0x2f5   : > { %535 = vmin.xlane.f32.xlu0 %v534_v40  ;;  %v539_v46 = vshll.u32 %v538_v44, 16 }
 0x2f6   : > { %v600_v41 = vpop.xlane.xlu1 %599 }
 0x2f7   : > { %vm601_vm10 = vcmp.eq.f32.partialorder %v598_v35, %v600_v41  ;;  %v606_v47 = vcvt.f32.s32 %v600_v41 }
 0x2f8   : > { %v602_v43 = vsel %vm601_vm10, %v597_v42, inf }
 0x2f9   : > { %603 = vmin.xlane.f32.xlu1 %v602_v43  ;;  %v607_v51 = vshll.u32 %v606_v47, 16 }
 0x37e   : > { %v536_v45 = vpop.xlane.xlu0 %535 }
 0x37f   : > { %v537_v48 = vcvt.f32.s32 %v536_v45 }
 0x381   : > { %v540_v49 = vadd.s32 %v539_v46, %v537_v48 }
 0x382   : > { %v604_v50 = vpop.xlane.xlu1 %603 }
 0x383   : > { %v605_v52 = vcvt.f32.s32 %v604_v50  ;;  %vm541_vm11 = vcmp.eq.s32.totalorder %v509_v13, %v540_v49 }
 0x384   : > { %v542_v53 = vsel %vm541_vm11, -3.4028235e+38, %v517_v19 }
 0x385   : > { %v608_v54 = vadd.s32 %v607_v51, %v605_v52  ;;  %v543_v55 = vsel %vm520_vm6, %v542_v53, -inf }
 0x386   : > { %544 = vmax.xlane.f32.xlu0 %v543_v55 }
 0x387   : > { %vm609_vm12 = vcmp.eq.s32.totalorder %v509_v13, %v608_v54 }
 0x388   : > { %v610_v56 = vsel %vm609_vm12, -3.4028235e+38, %v518_v22 }
 0x389   : > { %v611_v57 = vsel %vm520_vm6, %v610_v56, -inf }
 0x38a   : > { %612 = vmax.xlane.f32.xlu1 %v611_v57 }
 0x39b   : > { %615 = vrot.lane.b32.xlu1 %v588_v58, %s1252_s15 }
 0x39c   : > { %547 = vrot.lane.b32.xlu0 %v519_v59, %s1252_s15 }
 0x40f   : > { %v545_v60 = vpop.xlane.xlu0 %544 }
 0x413   : > { %v1537_v61 = vpop.xlane.xlu1 %612  ;;  %v548_v62 = vpop.permute.xlu0 %547 }
 0x414   : > { %v550_v63 = vmax.f32 %v519_v59, %v548_v62 }
 0x416   : > { %v551_v0 = vmax.f32 %v550_v63, %v1527_v26 }
 0x417   : > { %v616_v1 = vpop.permute.xlu1 %615 }
 0x418   : > { %v552_v2 = vmax.f32 %v551_v0, %v545_v60  ;;  %v618_v3 = vmax.f32 %v588_v58, %v616_v1 }
 0x41a   : > { %v619_v4 = vmax.f32 %v618_v3, %v1531_v29  ;;  %559 = vrot.lane.b32.xlu1 %v552_v2, %s1253_s22  ;;  %554 = vst.msk [vmem:[#allocation3] sm:$0xff] %vm1623_vm13, %v552_v2  ;;  %vm555_vm0 = vcmp.eq.f32.partialorder %v519_v59, %v552_v2  ;;  %vm571_vm9 = vcmp.eq.f32.partialorder %v1527_v26, %v552_v2 }
 0x41b   : > { %vm557_vm3 = vmxor %vm555_vm0, %vm1255_vm2  ;;  %v556_v13 = vsel %vm555_vm0, -3.4028235e+38, %v519_v59 }
 0x41c   : > { %v620_v5 = vmax.f32 %v619_v4, %v1537_v61 }
 0x41e   : > { %626 = vrot.lane.b32.xlu1 %v620_v5, %s1253_s22  ;;  %621 = vst.msk [vmem:[#allocation4] sm:$0xff] %vm1623_vm13, %v620_v5  ;;  %vm622_vm1 = vcmp.eq.f32.partialorder %v588_v58, %v620_v5 }
 0x41f   : > { %vm1549_vm5 = vmxor %vm622_vm1, %vm1255_vm2  ;;  %v623_v20 = vsel %vm622_vm1, -3.4028235e+38, %v588_v58 }
 0x48c   : > { %v560_v6 = vpop.permute.xlu1 %559 }
 0x48d   : > { %vm562_vm14 = vcmp.eq.f32.partialorder %v519_v59, %v560_v6 }
 0x48e   : > { %v563_v8 = vsel %vm562_vm14, 1, %v1254_v7 }
 0x48f   : > { %564 = vrot.lane.b32.xlu0 %v563_v8, %s1252_s15 }
 0x490   : > { %v627_v9 = vpop.permute.xlu1 %626 }
 0x491   : > { %vm629_vm15 = vcmp.eq.f32.partialorder %v588_v58, %v627_v9 }
 0x492   : > { %v630_v10 = vsel %vm629_vm15, 1, %v1254_v7  ;;  %vm576_vm15 = vcmp.eq.f32.partialorder %v545_v60, %v552_v2 }
 0x493   : > { %631 = vrot.lane.b32.xlu1 %v630_v10, %s1252_s15 }
 0x501   : > { %v565_v11 = vpop.permute.xlu0 %564 }
 0x502   : > { %vm566_vm4 = vcmp.ne.s32.totalorder %v565_v11, 0 }
 0x503   : > { %vm567_vm6 = vmand %vm557_vm3, %vm566_vm4  ;;  %vm638_vm4 = vcmp.eq.f32.partialorder %v1531_v29, %v620_v5 }
 0x504   : > { %v568_v14 = vsel %vm567_vm6, -3.4028235e+38, %v548_v62  ;;  %vm569_vm7 = vmor %vm555_vm0, %vm567_vm6 }
 0x505   : > { %vm570_vm8 = vmxor %vm569_vm7, %vm1255_vm2  ;;  %v579_v15 = vmax.f32 %v556_v13, %v568_v14  ;;  %v632_v16 = vpop.permute.xlu1 %631 }
 0x506   : > { %vm572_vm10 = vmand %vm570_vm8, %vm571_vm9  ;;  %vm633_vm12 = vcmp.ne.s32.totalorder %v632_v16, 0 }
 0x507   : > { %v573_v17 = vsel %vm572_vm10, -3.4028235e+38, %v1527_v26  ;;  %vm574_vm11 = vmor %vm569_vm7, %vm572_vm10 }
 0x508   : > { %vm575_vm14 = vmxor %vm574_vm11, %vm1255_vm2  ;;  %v580_v18 = vmax.f32 %v579_v15, %v573_v17 }
 0x509   : > { %vm577_vm13 = vmand %vm575_vm14, %vm576_vm15 }
 0x50a   : > { %vm634_vm3 = vmand %vm1549_vm5, %vm633_vm12  ;;  %v578_v19 = vsel %vm577_vm13, -3.4028235e+38, %v545_v60  ;;  %vm643_vm5 = vcmp.eq.f32.partialorder %v1537_v61, %v620_v5 }
 0x50b   : > { %v635_v21 = vsel %vm634_vm3, -3.4028235e+38, %v616_v1  ;;  %vm636_vm0 = vmor %vm622_vm1, %vm634_vm3  ;;  %v581_v22 = vmax.f32 %v580_v18, %v578_v19  ;;  %vm586_vm1 = vcmask 15368  }
 0x50c   : > { %vm637_vm6 = vmxor %vm636_vm0, %vm1255_vm2  ;;  %v646_v23 = vmax.f32 %v623_v20, %v635_v21 }
 0x50d   : > { %vm639_vm7 = vmand %vm637_vm6, %vm638_vm4  ;;  %583 = vrot.lane.b32.xlu0 %v581_v22, %s1253_s22 }
 0x50e   : > { %v640_v24 = vsel %vm639_vm7, -3.4028235e+38, %v1531_v29  ;;  %vm641_vm8 = vmor %vm636_vm0, %vm639_vm7 }
 0x50f   : > { %vm642_vm13 = vmxor %vm641_vm8, %vm1255_vm2  ;;  %v647_v25 = vmax.f32 %v646_v23, %v640_v24 }
 0x510   : > { %vm644_vm9 = vmand %vm642_vm13, %vm643_vm5 }
 0x511   : > { %v645_v26 = vsel %vm644_vm9, -3.4028235e+38, %v1537_v61 }
 0x512   : > { %v648_v27 = vmax.f32 %v647_v25, %v645_v26 }
 0x514   : > { %650 = vrot.lane.b32.xlu1 %v648_v27, %s1253_s22 }
 0x57f   : > { %v584_v28 = vpop.permute.xlu0 %583 }
 0x580   : > { %587 = vst.msk [vmem:[#allocation3] sm:$0xff] %vm586_vm1, %v584_v28 }
 0x583   : > { %657 = sbr.rel (%p881_p4) target bundleno = 1815 (0x717), region = 60 }
 0x586   : > { %v651_v30 = vpop.permute.xlu1 %650 }
 0x587   : > { %653 = vst.msk [vmem:[#allocation4] sm:$0xff] %vm586_vm1, %v651_v30 }
 0x588   : > { %v660_v29 = vld [vmem:[#allocation3] sm:$0xff]  ;;  %v658_v34 = vld [vmem:[#allocation2] sm:$0xff]  ;;  %vm1657_vm2 = vcmask 7168  }
 0x589   : > { %v661_v32 = vmul.f32 100.0, %v660_v29  ;;  %v659_v35 = vmul.f32 100.0, %v658_v34 }
 0x58b   : > { %663 = vrot.lane.b32.xlu0 %v661_v32, %s1256_s9 }
 0x58e   : > { %v686_v31 = vld [vmem:[#allocation4] sm:$0xff] }
 0x58f   : > { %v687_v33 = vmul.f32 100.0, %v686_v31 }
 0x591   : > { %689 = vrot.lane.b32.xlu0 %v687_v33, %s1256_s9 }
 0x5fd   : > { %v664_v36 = vpop.permute.xlu0 %663 }
 0x5fe   : > { %v666_v37 = vmax.f32 %v659_v35, %v664_v36 }
 0x600   : > { %671 = vrot.lane.b32.xlu1 %v666_v37, %s1257_s26  ;;  %v667_v48 = vsub.f32 %v659_v35, %v666_v37 }
 0x602   : > { %v668_v49 = vmul.f32 1.442695, %v667_v48 }
 0x603   : > { %v690_v38 = vpop.permute.xlu0 %689 }
 0x604   : > { %v692_v39 = vmax.f32 %v659_v35, %v690_v38 }
 0x606   : > { %697 = vrot.lane.b32.xlu1 %v692_v39, %s1257_s26  ;;  %v693_v50 = vsub.f32 %v659_v35, %v692_v39 }
 0x608   : > { %v694_v51 = vmul.f32 1.442695, %v693_v50 }
 0x672   : > { %v672_v40 = vpop.permute.xlu1 %671 }
 0x673   : > { %v674_v41 = vsub.f32 %v661_v32, %v672_v40 }
 0x675   : > { %v675_v42 = vmul.f32 1.442695, %v674_v41 }
 0x677   : > { %1017 = vpow2.f32 %v675_v42 }
 0x678   : > { %v698_v43 = vpop.permute.xlu1 %697 }
 0x679   : > { %v700_v44 = vsub.f32 %v687_v33, %v698_v43 }
 0x67b   : > { %v701_v45 = vmul.f32 1.442695, %v700_v44 }
 0x67d   : > { %1019 = vpow2.f32 %v701_v45 }
 0x67e   : > { %1021 = vpow2.f32 %v668_v49 }
 0x67f   : > { %1023 = vpow2.f32 %v694_v51 }
 0x684   : > { %v1018_v46 = vpop.eup %1017 }
 0x685   : > { %678 = vrot.lane.b32.xlu0 %v1018_v46, %s1256_s9 }
 0x68a   : > { %v1020_v47 = vpop.eup %1019 }
 0x68b   : > { %704 = vrot.lane.b32.xlu1 %v1020_v47, %s1256_s9  ;;  %v1022_v52 = vpop.eup %1021 }
 0x68c   : > { %v1024_v55 = vpop.eup %1023 }
 0x6f7   : > { %v679_v53 = vpop.permute.xlu0 %678 }
 0x6f8   : > { %v681_v54 = vadd.f32 %v1022_v52, %v679_v53 }
 0x6fa   : > { %1025 = vlog2.f32 %v681_v54 }
 0x6fd   : > { %v705_v56 = vpop.permute.xlu1 %704 }
 0x6fe   : > { %v707_v57 = vadd.f32 %v1024_v55, %v705_v56 }
 0x700   : > { %1027 = vlog2.f32 %v707_v57 }
 0x707   : > { %v1026_v58 = vpop.eup %1025 }
 0x708   : > { %v683_v59 = vmul.f32 0.6931472, %v1026_v58 }
 0x70a   : > { %v684_v61 = vadd.f32 %v683_v59, %v666_v37 }
 0x70c   : > { %v685_v0 = vsub.f32 %v684_v61, %v659_v35 }
 0x70d   : > { %v1028_v60 = vpop.eup %1027 }
 0x70e   : > { %v709_v62 = vmul.f32 0.6931472, %v1028_v60 }
 0x710   : > { %v710_v63 = vadd.f32 %v709_v62, %v692_v39 }
 0x712   : > { %v711_v1 = vsub.f32 %v710_v63, %v659_v35 }
 0x714   : > { %v712_v2 = vadd.f32 %v711_v1, %v685_v0 }
 0x716   : > { %713 = vst.msk [vmem:[%s1512_s4] sm:$0xff] %vm1657_vm2, %v712_v2 }
 0x717 PF: > { %s23_s25 = sadd.s32 1, %s1243_s25   ;;  %s1658_s8 = sld [smem:[#allocation20_spill]] }
 0x718   : > { %p20_p3 = scmp.ge.s32.totalorder %s23_s25, 6   ;;  %s1659_s22 = sld [smem:[#allocation18_spill]] }
 0x719   : > { %s1660_s13 = sld [smem:[#allocation19_spill]]  ;;  %s1662_s15 = smov %s1207_s16 }
 0x71a   : > { %s1661_s24 = sld [smem:[#allocation21_spill]]  ;;  %s1663_s16 = smov %s1211_s17 }
 0x71b   : > { %s1665_s18 = smov %s1219_s19  ;;  %s1666_s19 = smov %s1223_s20 }
 0x71c   : > { %s1667_s20 = smov %s1437_s21  ;;  %s1668_s21 = smov %s1235_s23 }
 0x71d   : > { %s1664_s17 = smov %s1658_s8  ;;  %22 = sbr.rel (!%p20_p3) target bundleno = 15 (0xf), region = 121 }
 0x71f   : > { %s1669_s23 = smov %s1660_s13 }
 0x722   :  { %733 = vsyncpa [#allocation6], 1 }
 0x723   :  { %735 = vsyncpa [#allocation6 + $0x1], 1 }
 0x724   :  { %736 = vsyncpa [#allocation8], 1 }
 0x725   :  { %738 = vsyncpa [#allocation8 + $0x1], 1 }
 0x726   :  { %739 = vsyncpa [#allocation11], 1 }
 0x727   :  { %741 = vsyncpa [#allocation11 + $0x1], 1 }

</bundles_post_ra>
